<compile_context>
chip_gen: v6e
topology: v6e:2x2x1
jax: 0.10.0
libtpu: 0.0.40
codegen_flags: <defaults>
</compile_context>

<pallas_src>
import functools

import jax
import jax.numpy as jnp
from jax.experimental import pallas as pl
from jax.experimental.pallas import tpu as pltpu


def _round_up(x, m):
    return (x + m - 1) // m * m


def _divisor_tile(dim_padded, preferred, align):
    """Largest multiple of `align` that divides `dim_padded` and is <= preferred.

    Falls back to `align` (which always divides, since `dim_padded` is a
    multiple of `align`). Avoids padding the reduction / output dims beyond
    the next `align` multiple.
    """
    if dim_padded <= preferred:
        return dim_padded
    t = max((preferred // align) * align, align)
    while t > align and dim_padded % t:
        t -= align
    return t


def _vmem_capacity_bytes():
    try:
        return int(pltpu.get_tpu_info().vmem_capacity_bytes)
    except Exception:
        return 64 * 1024 * 1024  # conservative default: v7x per-TensorCore VMEM


# ----------------------------- Pallas kernel ------------------------------ #
def _linear_kernel(x_ref, w_ref, b_ref, o_ref):
    """One (TM, TN) output tile; K (grid axis 2, 'arbitrary') is the reduction.

    The f32 output block itself is the accumulator: its BlockSpec index map
    ignores k, so it stays resident in VMEM across the K loop. No scratch.
    """
    k = pl.program_id(2)

    @pl.when(k == 0)
    def _init():
        o_ref[...] = jnp.zeros_like(o_ref)

    # MXU matmul on bf16 operands with f32 accumulation.
    o_ref[...] += jnp.dot(x_ref[...], w_ref[...],
                          preferred_element_type=jnp.float32)

    @pl.when(k == pl.num_programs(2) - 1)
    def _finalize():
        o_ref[...] += b_ref[...]  # bias added once, kept out of the K loop


# ----------------------------- Tiling plan --------------------------------- #
class LinearPlan:
    """One-time tile / padding plan for a (K, N) weight, VMEM-budget aware."""

    def __init__(self, in_features, out_features, *, tn_pref=512, tk_pref=2048):
        vmem = _vmem_capacity_bytes()
        budget = vmem // 3  # leave room for double-buffering + compiler scratch

        Kp = _round_up(in_features, 128)
        Np = _round_up(out_features, 128)
        # Prefer 256-multiples (v6e/v7x 2x256 MXU); 128-multiples still fine on v5e.
        tn = _divisor_tile(Np, tn_pref, 128)
        tk = _divisor_tile(Kp, tk_pref, 128)

        tm_max = 256  # budget assumes the largest tm ever used per call

        def footprint(tk_, tn_):
            x_b = 2 * tm_max * tk_ * 2           # double-buffered bf16 x tile
            w_b = 3 * tk_ * tn_ * 2              # W tiles (allow Buffered(3))
            o_b = 2 * tm_max * tn_ * 4           # f32 output/accumulator tile
            bia = 2 * tn_ * 4
            return x_b + w_b + o_b + bia

        while footprint(tk, tn) > budget and tk > 128:
            tk = _divisor_tile(Kp, tk // 2, 128)
        while footprint(tk, tn) > budget and tn > 128:
            tn = _divisor_tile(Np, tn // 2, 128)

        self.K, self.N = in_features, out_features
        self.Kp, self.Np = Kp, Np
        self.tk, self.tn = tk, tn
        # Explicit scoped-VMEM limit: generous headroom, but never above what
        # the chip physically has (important on v7x's 64 MiB).
        self.vmem_limit = int(min(vmem * 3 // 4,
                                  max(2 * footprint(tk, tn), 32 * 2 ** 20)))


def prepare_weights(w, b, plan):
    """One-time weight prep: bf16 cast + pad to tile multiples (done at init)."""
    assert w.shape == (plan.K, plan.N) and b.shape == (1, plan.N)
    w_bf = jnp.pad(w.astype(jnp.bfloat16),
                   ((0, plan.Kp - plan.K), (0, plan.Np - plan.N)))
    b_f32 = jnp.pad(b.astype(jnp.float32), ((0, 0), (0, plan.Np - plan.N)))
    # TODO(synk): on v7x, fp8 weights (no int8 MXU path there) would halve the
    # weight stream again if the quantization error budget allows.
    return w_bf, b_f32


def pallas_linear(x, w_padded, b_padded, *, plan):
    """y = x @ W + b with pre-padded bf16 W and f32 bias; returns x.dtype."""
    M, K = x.shape
    assert K == plan.K
    Kp, Np, tk, tn = plan.Kp, plan.Np, plan.tk, plan.tn

    # Don't pad tiny batches to a full 128-row MXU tile.
    if M < 128:
        tm = _round_up(M, 16)                    # bf16 sublane packing
    else:
        tm = min(256, _round_up(M, 128))         # 256-wide for v6e/v7x MXU
    Mp = _round_up(M, tm)

    x_bf = x.astype(jnp.bfloat16)
    if (Mp, Kp) != (M, K):
        x_bf = jnp.pad(x_bf, ((0, Mp - M), (0, Kp - K)))

    grid = (Mp // tm, Np // tn, Kp // tk)

    # Truthful bytes_accessed: x re-streamed per N block, W per M block.
    cost = pl.CostEstimate(
        flops=2 * Mp * Np * Kp,
        transcendentals=0,
        bytes_accessed=(Mp * Kp * 2 * grid[1]
                        + Kp * Np * 2 * grid[0]
                        + Np * 4 * grid[0]
                        + Mp * Np * 4),
    )

    # Extra W pipelining depth only in the tiny-M, deep-K weight-streaming
    # regime (accounted for in LinearPlan's VMEM budget).
    w_spec_kwargs = {}
    if M <= 32 and grid[2] >= 8:
        w_spec_kwargs["pipeline_mode"] = pl.Buffered(3)

    out = pl.pallas_call(
        _linear_kernel,
        out_shape=jax.ShapeDtypeStruct((Mp, Np), jnp.float32),
        grid_spec=pltpu.PrefetchScalarGridSpec(
            num_scalar_prefetch=0,
            grid=grid,
            in_specs=[
                pl.BlockSpec((tm, tk), lambda i, j, k: (i, k)),               # x
                pl.BlockSpec((tk, tn), lambda i, j, k: (k, j), **w_spec_kwargs),  # W
                pl.BlockSpec((1, tn), lambda i, j, k: (0, j)),                # bias
            ],
            out_specs=pl.BlockSpec((tm, tn), lambda i, j, k: (i, j)),
        ),
        compiler_params=pltpu.CompilerParams(
            dimension_semantics=("parallel", "parallel", "arbitrary"),
            vmem_limit_bytes=plan.vmem_limit,
        ),
        cost_estimate=cost,
    )(x_bf, w_padded, b_padded)

    # TODO(synk): a bf16 output option would halve writeback; kept f32 here to
    # match the input dtype (and to accumulate directly in the output block).
    return out[:M, :plan.N].astype(x.dtype)


# ------------------------ Wrapped "model to trace" ------------------------ #
class LinearModel:
    """A tiny model whose forward is the Pallas linear kernel."""

    def __init__(self, key, in_features, out_features, dtype=jnp.float32,
                 *, tn_pref=512, tk_pref=2048):
        kw, kb = jax.random.split(key)
        scale = jnp.asarray(1.0 / float(in_features) ** 0.5, dtype)
        self.w = jax.random.normal(kw, (in_features, out_features), dtype) * scale
        self.b = (jax.random.normal(kb, (1, out_features), dtype)
                  * jnp.asarray(0.1, dtype))

        # One-time plan + weight prep (bf16 cast + pad). Not repeated per call.
        self.plan = LinearPlan(in_features, out_features,
                               tn_pref=tn_pref, tk_pref=tk_pref)
        self.w_dev, self.b_dev = prepare_weights(self.w, self.b, self.plan)

        # jit fuses the activation cast/pad and the output slice with the
        # pallas_call instead of running them as separate un-jitted XLA ops.
        self._fwd = jax.jit(functools.partial(pallas_linear, plan=self.plan))

    def __call__(self, x):
        return self._fwd(x, self.w_dev, self.b_dev)


# --------------------- _JitTraceExportWrapper equivalent ------------------- #
class JitTraceExportWrapper:
    """JAX equivalent of brevitas' _JitTraceExportWrapper.

    forward(*args, **kwargs) simply delegates to the wrapped model.
    """

    def __init__(self, model_to_trace):
        self.fn_to_trace = lambda *args, **kwargs: model_to_trace(*args, **kwargs)

    def __call__(self, *args, **kwargs):
        return self.fn_to_trace(*args, **kwargs)


# ---------------------------------- main ----------------------------------- #
if __name__ == "__main__":
    key = jax.random.PRNGKey(0)
    k_model, k_model2, k_x, k_x2 = jax.random.split(key, 4)

    def check(model, x):
        wrapper = JitTraceExportWrapper(model)
        y = jax.block_until_ready(wrapper(x))  # delegation path (forward semantics)
        # Reference with the same bf16 operand rounding as the kernel, f32 acc.
        x_bf = x.astype(jnp.bfloat16).astype(jnp.float32)
        w_bf = model.w.astype(jnp.bfloat16).astype(jnp.float32)
        y_ref = x_bf @ w_bf + model.b
        assert y.shape == y_ref.shape
        assert y.dtype == x.dtype
        assert jnp.allclose(y, y_ref, atol=1e-2, rtol=1e-2), \
            float(jnp.max(jnp.abs(y - y_ref)))

    # 1) Default tiles (single-step grid at this small shape).
    batch, in_features, out_features = 8, 512, 256
    model = LinearModel(k_model, in_features, out_features)
    x = jax.random.normal(k_x, (batch, in_features), jnp.float32)
    check(model, x)

    # 2) Small preferred tiles at a tiny test shape to exercise the multi-step
    #    (M, N, K) grid and the accumulate-into-output / bias-finalize path.
    model2 = LinearModel(k_model2, 384, 256, tn_pref=128, tk_pref=128)
    x2 = jax.random.normal(k_x2, (batch, 384), jnp.float32)
    check(model2, x2)

    # TODO(synk): the original wrapper accepts an arbitrary model_to_trace;
    # only a representative Linear model is materialized here since no concrete
    # wrapped model is specified by the module's __init__.
    print("KERNEL_OK")
</pallas_src>

<mosaic_0001>
module attributes {stable_mosaic.version = 11 : i64} {
  func.func @_linear_kernel(%arg0: i32, %arg1: i32, %arg2: i32, %arg3: memref<16x512xbf16, #tpu.memory_space<vmem>>, %arg4: memref<512x256xbf16, #tpu.memory_space<vmem>>, %arg5: memref<1x256xf32, #tpu.memory_space<vmem>>, %arg6: memref<16x256xf32, #tpu.memory_space<vmem>>) attributes {dimension_semantics = [#tpu.dimension_semantics<parallel>, #tpu.dimension_semantics<parallel>, #tpu.dimension_semantics<arbitrary>], iteration_bounds = array<i64: 1, 1, 1>, scalar_prefetch = 0 : i64, scratch_operands = 0 : i64, tpu.core_type = #tpu.core_type<tc>, window_params = [{transform_indices = @transform_0, window_bounds = array<i64: 16, 512>}, {transform_indices = @transform_1, window_bounds = array<i64: 512, 256>}, {transform_indices = @transform_2, window_bounds = array<i64: 1, 256>}, {transform_indices = @transform_3, window_bounds = array<i64: 16, 256>}]} {
    %c0_i32 = arith.constant 0 : i32
    %0 = arith.cmpi eq, %arg2, %c0_i32 : i32
    %1 = arith.extui %0 : i1 to i32
    %c0_i32_0 = arith.constant 0 : i32
    %2 = arith.cmpi ne, %1, %c0_i32_0 : i32
    scf.if %2 {
      %cst_10 = arith.constant 0.000000e+00 : f32
      %12 = vector.broadcast %cst_10 : f32 to vector<16x256xf32>
      %c0_11 = arith.constant 0 : index
      %c0_12 = arith.constant 0 : index
      %13 = vector.load %arg6[%c0_11, %c0_12] : memref<16x256xf32, #tpu.memory_space<vmem>>, vector<16x256xf32>
      tpu.vector_store %arg6[%c0_11, %c0_12], %12 {strides = array<i32>} : memref<16x256xf32, #tpu.memory_space<vmem>>, vector<16x256xf32>,
    } else {
    }
    %c0 = arith.constant 0 : index
    %c0_1 = arith.constant 0 : index
    %3 = vector.load %arg6[%c0, %c0_1] : memref<16x256xf32, #tpu.memory_space<vmem>>, vector<16x256xf32>
    %c0_2 = arith.constant 0 : index
    %c0_3 = arith.constant 0 : index
    %4 = vector.load %arg3[%c0_2, %c0_3] : memref<16x512xbf16, #tpu.memory_space<vmem>>, vector<16x512xbf16>
    %c0_4 = arith.constant 0 : index
    %c0_5 = arith.constant 0 : index
    %5 = vector.load %arg4[%c0_4, %c0_5] : memref<512x256xbf16, #tpu.memory_space<vmem>>, vector<512x256xbf16>
    %cst = arith.constant dense<0.000000e+00> : vector<16x256xf32>
    %6 = tpu.matmul %4, %5, %cst {dimension_numbers = #tpu.dot_dimension_numbers<[1], [0], [0], [1], [0, 0, 1, 1], [], []>} : vector<16x512xbf16>, vector<512x256xbf16>, vector<16x256xf32> -> vector<16x256xf32>
    %7 = arith.addf %3, %6 : vector<16x256xf32>
    %c0_6 = arith.constant 0 : index
    %c0_7 = arith.constant 0 : index
    %8 = vector.load %arg6[%c0_6, %c0_7] : memref<16x256xf32, #tpu.memory_space<vmem>>, vector<16x256xf32>
    tpu.vector_store %arg6[%c0_6, %c0_7], %7 {strides = array<i32>} : memref<16x256xf32, #tpu.memory_space<vmem>>, vector<16x256xf32>,
    %c0_i32_8 = arith.constant 0 : i32
    %9 = arith.cmpi eq, %arg2, %c0_i32_8 : i32
    %10 = arith.extui %9 : i1 to i32
    %c0_i32_9 = arith.constant 0 : i32
    %11 = arith.cmpi ne, %10, %c0_i32_9 : i32
    scf.if %11 {
      %c0_10 = arith.constant 0 : index
      %c0_11 = arith.constant 0 : index
      %12 = vector.load %arg6[%c0_10, %c0_11] : memref<16x256xf32, #tpu.memory_space<vmem>>, vector<16x256xf32>
      %c0_12 = arith.constant 0 : index
      %c0_13 = arith.constant 0 : index
      %13 = vector.load %arg5[%c0_12, %c0_13] : memref<1x256xf32, #tpu.memory_space<vmem>>, vector<1x256xf32>
      %14 = vector.broadcast %13 : vector<1x256xf32> to vector<16x256xf32>
      %15 = arith.addf %12, %14 : vector<16x256xf32>
      %c0_14 = arith.constant 0 : index
      %c0_15 = arith.constant 0 : index
      %16 = vector.load %arg6[%c0_14, %c0_15] : memref<16x256xf32, #tpu.memory_space<vmem>>, vector<16x256xf32>
      tpu.vector_store %arg6[%c0_14, %c0_15], %15 {strides = array<i32>} : memref<16x256xf32, #tpu.memory_space<vmem>>, vector<16x256xf32>,
    } else {
    }
    return
  }
  func.func @transform_0(%arg0: i32, %arg1: i32, %arg2: i32) -> (i32, i32) {
    %c0_i32 = arith.constant 0 : i32
    return %arg0, %arg2 : i32, i32
  }
  func.func @transform_1(%arg0: i32, %arg1: i32, %arg2: i32) -> (i32, i32) {
    %c0_i32 = arith.constant 0 : i32
    return %arg2, %arg1 : i32, i32
  }
  func.func @transform_2(%arg0: i32, %arg1: i32, %arg2: i32) -> (i32, i32) {
    %c0_i32 = arith.constant 0 : i32
    %c0_i32_0 = arith.constant 0 : i32
    return %c0_i32, %arg1 : i32, i32
  }
  func.func @transform_3(%arg0: i32, %arg1: i32, %arg2: i32) -> (i32, i32) {
    %c0_i32 = arith.constant 0 : i32
    return %arg0, %arg1 : i32, i32
  }
}

</mosaic_0001>

<bundles_post_ra>
// kernel: pallas_linear.1
= control target key start
LH: loop header
LB: loop body
LE: loop exit
PB: predicated region body
PF: predicated region fallthrough
CT: control target
= control target key end

     0   :  { %8 = vsyncpa [#allocation3], 0  ;;  %s770_s12 = smov [#allocation2]   ;;  %s823_s0 = inlined_call_operand.vmem [shape: bf16[16,512], index: 0, kind: input, shape index: {}]   ;;  %s824_s1 = inlined_call_operand.hbm [shape: bf16[512,256], index: 1, kind: input, shape index: {}]   ;;  %s825_s2 = inlined_call_operand.vmem [shape: f32[1,256], index: 2, kind: input, shape index: {}]   ;;  %s826_s3 = inlined_call_operand.vmem [shape: f32[16,256], index: 3, kind: output, shape index: {}]  }
   0x1   :  { %s16_s13 = sshll.u32 %s770_s12, 4  ;;  %s17_s13 = int_to_ptr.vmem [resolvable:$true] %s16_s13 }
   0x2   :  { %s756_s14 = scalar_lea.vmem %s17_s13, 8192  ;;  %p761_p1 = scmp.lt.s32.totalorder %s17_s13, %s17_s13 }
   0x3   :  { %p757_p0 = scmp.ne.s32.totalorder %s17_s13, %s756_s14  ;;  %p762_p2 = scmp.lt.s32.totalorder %s756_s14, %s756_s14 }
   0x5   :  { %p763_p3 = por %p762_p2, %p761_p1 }
   0x7   :  { %p764_p4 = pnand %p763_p3, %p757_p0 }
   0x9   :  { %767 = shalt.err (!%p764_p4)
}
   0xa   :  { %s771_s15 = smov 128   ;;  %s772_s16 = smov 8  }
   0xb   :  { %22 = dma.hbm_to_vmem [thread:$0]  %s824_s1, 8192, %s17_s13, [#allocation3], %s771_s15, %s771_s15, %s772_s16  }
   0xc   :  { %768 = dma.done.wait [#allocation3], 8192  }
   0xd   :  { %769 = vsyncadd [#allocation3], 4294959104  ;;  %v646_v0 = vld [vmem:[#allocation2 + $0x74] ss:$8 sps:$4 sm:$0xff]   ;;  %v650_v2 = vld [vmem:[#allocation2 + $0x70] ss:$8 sps:$4 sm:$0xff]  }
   0xe   :  { %v648_v1 = vld [vmem:[#allocation2 + $0x174] ss:$8 sps:$4 sm:$0xff]   ;;  %448 = vmatprep.subr.bf16.mxu0 %v646_v0  ;;  %v651_v3 = vld [vmem:[#allocation2 + $0x170] ss:$8 sps:$4 sm:$0xff]   ;;  %v652_v4 = vld [vmem:[#allocation2 + $0x64] ss:$8 sps:$4 sm:$0xff]  }
   0xf   :  { %491 = vmatprep.subr.bf16.mxu1 %v648_v1  ;;  %449 = vmatpush1.bf16.msra.mxu0 %v650_v2  ;;  %v654_v5 = vld [vmem:[#allocation2 + $0x164] ss:$8 sps:$4 sm:$0xff]   ;;  %v656_v6 = vld [vmem:[#allocation2 + $0x60] ss:$8 sps:$4 sm:$0xff]   ;;  %v658_v8 = vld [vmem:[#allocation2 + $0x54] ss:$8 sps:$4 sm:$0xff]  }
  0x10   :  { %492 = vmatpush1.bf16.msra.mxu1 %v651_v3  ;;  %450 = vmatprep.subr.bf16.mxu0 %v652_v4  ;;  %v657_v7 = vld [vmem:[#allocation2 + $0x160] ss:$8 sps:$4 sm:$0xff]   ;;  %v660_v9 = vld [vmem:[#allocation2 + $0x154] ss:$8 sps:$4 sm:$0xff]   ;;  %v662_v10 = vld [vmem:[#allocation2 + $0x50] ss:$8 sps:$4 sm:$0xff]   ;;  %v551_v4 = vlaneseq }
  0x11   :  { %493 = vmatprep.subr.bf16.mxu1 %v654_v5  ;;  %v663_v11 = vld [vmem:[#allocation2 + $0x150] ss:$8 sps:$4 sm:$0xff]   ;;  %v664_v12 = vld [vmem:[#allocation2 + $0x44] ss:$8 sps:$4 sm:$0xff]   ;;  %v668_v14 = vld [vmem:[#allocation2 + $0x40] ss:$8 sps:$4 sm:$0xff]  }
  0x12   :  { %v666_v13 = vld [vmem:[#allocation2 + $0x144] ss:$8 sps:$4 sm:$0xff]   ;;  %v669_v15 = vld [vmem:[#allocation2 + $0x140] ss:$8 sps:$4 sm:$0xff]   ;;  %v670_v16 = vld [vmem:[#allocation2 + $0x34] ss:$8 sps:$4 sm:$0xff]  }
  0x13   :  { %451 = vmatpush1.bf16.msra.mxu0 %v656_v6  ;;  %v672_v17 = vld [vmem:[#allocation2 + $0x134] ss:$8 sps:$4 sm:$0xff]   ;;  %v674_v18 = vld [vmem:[#allocation2 + $0x30] ss:$8 sps:$4 sm:$0xff]   ;;  %v676_v20 = vld [vmem:[#allocation2 + $0x24] ss:$8 sps:$4 sm:$0xff]  }
  0x14   :  { %494 = vmatpush1.bf16.msra.mxu1 %v657_v7  ;;  %452 = vmatprep.subr.bf16.mxu0 %v658_v8  ;;  %v675_v19 = vld [vmem:[#allocation2 + $0x130] ss:$8 sps:$4 sm:$0xff]   ;;  %v678_v21 = vld [vmem:[#allocation2 + $0x124] ss:$8 sps:$4 sm:$0xff]   ;;  %v680_v22 = vld [vmem:[#allocation2 + $0x20] ss:$8 sps:$4 sm:$0xff]  }
  0x15   :  { %495 = vmatprep.subr.bf16.mxu1 %v660_v9  ;;  %v681_v23 = vld [vmem:[#allocation2 + $0x120] ss:$8 sps:$4 sm:$0xff]   ;;  %v682_v24 = vld [vmem:[#allocation2 + $0x14] ss:$8 sps:$4 sm:$0xff]   ;;  %v686_v26 = vld [vmem:[#allocation2 + $0x10] ss:$8 sps:$4 sm:$0xff]  }
  0x16   :  { %v684_v25 = vld [vmem:[#allocation2 + $0x114] ss:$8 sps:$4 sm:$0xff]   ;;  %v687_v27 = vld [vmem:[#allocation2 + $0x110] ss:$8 sps:$4 sm:$0xff]   ;;  %v688_v28 = vld [vmem:[#allocation2 + $0x4] ss:$8 sps:$4 sm:$0xff]  }
  0x17   :  { %453 = vmatpush1.bf16.msra.mxu0 %v662_v10  ;;  %v690_v29 = vld [vmem:[#allocation2 + $0x104] ss:$8 sps:$4 sm:$0xff]   ;;  %v692_v30 = vld [vmem:[#allocation2] ss:$8 sps:$4 sm:$0xff]   ;;  %v694_v32 = vld [vmem:[#allocation2 + $0xf4] ss:$8 sps:$4 sm:$0xff]  }
  0x18   :  { %496 = vmatpush1.bf16.msra.mxu1 %v663_v11  ;;  %454 = vmatprep.subr.bf16.mxu0 %v664_v12  ;;  %v693_v31 = vld [vmem:[#allocation2 + $0x100] ss:$8 sps:$4 sm:$0xff]   ;;  %v696_v33 = vld [vmem:[#allocation2 + $0x1f4] ss:$8 sps:$4 sm:$0xff]   ;;  %v698_v34 = vld [vmem:[#allocation2 + $0xf0] ss:$8 sps:$4 sm:$0xff]  }
  0x19   :  { %497 = vmatprep.subr.bf16.mxu1 %v666_v13  ;;  %v699_v35 = vld [vmem:[#allocation2 + $0x1f0] ss:$8 sps:$4 sm:$0xff]   ;;  %v700_v36 = vld [vmem:[#allocation2 + $0xe4] ss:$8 sps:$4 sm:$0xff]   ;;  %v704_v38 = vld [vmem:[#allocation2 + $0xe0] ss:$8 sps:$4 sm:$0xff]  }
  0x1a   :  { %v702_v37 = vld [vmem:[#allocation2 + $0x1e4] ss:$8 sps:$4 sm:$0xff]   ;;  %v705_v39 = vld [vmem:[#allocation2 + $0x1e0] ss:$8 sps:$4 sm:$0xff]   ;;  %v706_v40 = vld [vmem:[#allocation2 + $0xd4] ss:$8 sps:$4 sm:$0xff]  }
  0x1b   :  { %455 = vmatpush1.bf16.msra.mxu0 %v668_v14  ;;  %v708_v41 = vld [vmem:[#allocation2 + $0x1d4] ss:$8 sps:$4 sm:$0xff]   ;;  %v710_v42 = vld [vmem:[#allocation2 + $0xd0] ss:$8 sps:$4 sm:$0xff]   ;;  %v712_v44 = vld [vmem:[#allocation2 + $0xc4] ss:$8 sps:$4 sm:$0xff]  }
  0x1c   :  { %498 = vmatpush1.bf16.msra.mxu1 %v669_v15  ;;  %456 = vmatprep.subr.bf16.mxu0 %v670_v16  ;;  %v711_v43 = vld [vmem:[#allocation2 + $0x1d0] ss:$8 sps:$4 sm:$0xff]   ;;  %v714_v45 = vld [vmem:[#allocation2 + $0x1c4] ss:$8 sps:$4 sm:$0xff]   ;;  %v716_v46 = vld [vmem:[#allocation2 + $0xc0] ss:$8 sps:$4 sm:$0xff]  }
  0x1d   :  { %499 = vmatprep.subr.bf16.mxu1 %v672_v17  ;;  %v744_v47 = vld [vmem:[%s823_s0 + $0x4] ss:$16 sps:$4 sm:$0xff]   ;;  %v717_v48 = vld [vmem:[#allocation2 + $0x1c0] ss:$8 sps:$4 sm:$0xff]   ;;  %v747_v51 = vld [vmem:[%s823_s0 + $0xc] ss:$16 sps:$4 sm:$0xff]  }
  0x1e   :  { %v718_v49 = vld [vmem:[#allocation2 + $0xb4] ss:$8 sps:$4 sm:$0xff]   ;;  %480 = vmatprep.mubr.bf16.mxu0 %v744_v47  ;;  %523 = vmatprep.mubr.bf16.mxu1 %v747_v51  ;;  %v722_v52 = vld [vmem:[#allocation2 + $0xb0] ss:$8 sps:$4 sm:$0xff]   ;;  %v724_v54 = vld [vmem:[#allocation2 + $0xa4] ss:$8 sps:$4 sm:$0xff]  }
  0x1f   :  { %457 = vmatpush1.bf16.msra.mxu0 %v674_v18  ;;  %v720_v50 = vld [vmem:[#allocation2 + $0x1b4] ss:$8 sps:$4 sm:$0xff]   ;;  %v723_v53 = vld [vmem:[#allocation2 + $0x1b0] ss:$8 sps:$4 sm:$0xff]   ;;  %v726_v55 = vld [vmem:[#allocation2 + $0x1a4] ss:$8 sps:$4 sm:$0xff]  }
  0x20   :  { %500 = vmatpush1.bf16.msra.mxu1 %v675_v19  ;;  %458 = vmatprep.subr.bf16.mxu0 %v676_v20  ;;  %v728_v56 = vld [vmem:[#allocation2 + $0xa0] ss:$8 sps:$4 sm:$0xff]   ;;  %v730_v58 = vld [vmem:[#allocation2 + $0x94] ss:$8 sps:$4 sm:$0xff]   ;;  %v734_v60 = vld [vmem:[#allocation2 + $0x90] ss:$8 sps:$4 sm:$0xff]  }
  0x21   :  { %501 = vmatprep.subr.bf16.mxu1 %v678_v21  ;;  %v729_v57 = vld [vmem:[#allocation2 + $0x1a0] ss:$8 sps:$4 sm:$0xff]   ;;  %v732_v59 = vld [vmem:[#allocation2 + $0x194] ss:$8 sps:$4 sm:$0xff]   ;;  %v735_v61 = vld [vmem:[#allocation2 + $0x190] ss:$8 sps:$4 sm:$0xff]  }
  0x22   :  { %v736_v62 = vld [vmem:[#allocation2 + $0x84] ss:$8 sps:$4 sm:$0xff]   ;;  %v740_v0 = vld [vmem:[#allocation2 + $0x80] ss:$8 sps:$4 sm:$0xff]   ;;  %v552_v5 = vshrl.u32 %v551_v4, 7 }
  0x23   :  { %459 = vmatpush1.bf16.msra.mxu0 %v680_v22  ;;  %v738_v63 = vld [vmem:[#allocation2 + $0x184] ss:$8 sps:$4 sm:$0xff]   ;;  %v741_v1 = vld [vmem:[#allocation2 + $0x180] ss:$8 sps:$4 sm:$0xff]  }
  0x24   :  { %502 = vmatpush1.bf16.msra.mxu1 %v681_v23  ;;  %460 = vmatprep.subr.bf16.mxu0 %v682_v24  ;;  %v742_v2 = vld [vmem:[%s823_s0] ss:$16 sps:$4 sm:$0xff]   ;;  %v745_v3 = vld [vmem:[%s823_s0 + $0x8] ss:$16 sps:$4 sm:$0xff]   ;;  %v553_v6 = vsub.s32 0, %v552_v5  ;;  %v557_v8 = vsub.s32 1, %v552_v5 }
  0x25   :  { %503 = vmatprep.subr.bf16.mxu1 %v684_v25  ;;  %v549_v7 = vld [vmem:[%s825_s2] sm:$0x3] }
  0x26   :  { %v554_v12 = vrot.slane %v549_v7, %v553_v6  ;;  %v558_v16 = vrot.slane %v549_v7, %v557_v8 }
  0x27   :  { %461 = vmatpush1.bf16.msra.mxu0 %v686_v26 }
  0x28   :  { %504 = vmatpush1.bf16.msra.mxu1 %v687_v27  ;;  %462 = vmatprep.subr.bf16.mxu0 %v688_v28 }
  0x29   :  { %505 = vmatprep.subr.bf16.mxu1 %v690_v29 }
  0x2b   :  { %463 = vmatpush1.bf16.msra.mxu0 %v692_v30 }
  0x2c   :  { %506 = vmatpush1.bf16.msra.mxu1 %v693_v31  ;;  %464 = vmatprep.subr.bf16.mxu0 %v694_v32 }
  0x2d   :  { %507 = vmatprep.subr.bf16.mxu1 %v696_v33 }
  0x2f   :  { %465 = vmatpush2.bf16.msra.mxu0 %v698_v34 }
  0x30   :  { %508 = vmatpush2.bf16.msra.mxu1 %v699_v35  ;;  %466 = vmatprep.subr.bf16.mxu0 %v700_v36 }
  0x31   :  { %509 = vmatprep.subr.bf16.mxu1 %v702_v37 }
  0x33   :  { %467 = vmatpush2.bf16.msra.mxu0 %v704_v38 }
  0x34   :  { %510 = vmatpush2.bf16.msra.mxu1 %v705_v39  ;;  %468 = vmatprep.subr.bf16.mxu0 %v706_v40 }
  0x35   :  { %511 = vmatprep.subr.bf16.mxu1 %v708_v41 }
  0x37   :  { %469 = vmatpush2.bf16.msra.mxu0 %v710_v42 }
  0x38   :  { %512 = vmatpush2.bf16.msra.mxu1 %v711_v43  ;;  %470 = vmatprep.subr.bf16.mxu0 %v712_v44 }
  0x39   :  { %513 = vmatprep.subr.bf16.mxu1 %v714_v45 }
  0x3b   :  { %471 = vmatpush2.bf16.msra.mxu0 %v716_v46 }
  0x3c   :  { %514 = vmatpush2.bf16.msra.mxu1 %v717_v48  ;;  %472 = vmatprep.subr.bf16.mxu0 %v718_v49 }
  0x3d   :  { %515 = vmatprep.subr.bf16.mxu1 %v720_v50 }
  0x3f   :  { %473 = vmatpush2.bf16.msra.mxu0 %v722_v52 }
  0x40   :  { %516 = vmatpush2.bf16.msra.mxu1 %v723_v53  ;;  %474 = vmatprep.subr.bf16.mxu0 %v724_v54 }
  0x41   :  { %517 = vmatprep.subr.bf16.mxu1 %v726_v55 }
  0x43   :  { %475 = vmatpush2.bf16.msra.mxu0 %v728_v56 }
  0x44   :  { %518 = vmatpush2.bf16.msra.mxu1 %v729_v57  ;;  %476 = vmatprep.subr.bf16.mxu0 %v730_v58 }
  0x45   :  { %519 = vmatprep.subr.bf16.mxu1 %v732_v59 }
  0x47   :  { %477 = vmatpush2.bf16.msra.mxu0 %v734_v60 }
  0x48   :  { %520 = vmatpush2.bf16.msra.mxu1 %v735_v61  ;;  %478 = vmatprep.subr.bf16.mxu0 %v736_v62 }
  0x49   :  { %521 = vmatprep.subr.bf16.mxu1 %v738_v63 }
  0x4b   :  { %479 = vmatpush2.bf16.msra.mxu0 %v740_v0 }
  0x4c   :  { %522 = vmatpush2.bf16.msra.mxu1 %v741_v1 }
  0x4e   :  { %481 = vmatmul.mubr.bf16.vlgmr.msra.gmra.mxu0 %v742_v2 }
  0x4f   :  { %524 = vmatmul.mubr.bf16.vlgmr.msra.gmra.mxu1 %v745_v3 }
 0x10e   :  { %v482_v9 = vpop.f32.mrf.mxu0 }
 0x10f   :  { %v525_v10 = vpop.f32.mrf.mxu1 }
 0x110   :  { %v526_v11 = vadd.f32 %v525_v10, %v482_v9  ;;  %v484_v13 = vpop.f32.mrf.mxu0 }
 0x111   :  { %v527_v14 = vpop.f32.mrf.mxu1 }
 0x112   :  { %v528_v15 = vadd.f32 %v527_v14, %v484_v13  ;;  %v486_v17 = vpop.f32.mrf.mxu0  ;;  %v561_v19 = vadd.f32 %v554_v12, %v526_v11 }
 0x113   :  { %v529_v18 = vpop.f32.mrf.mxu1 }
 0x114   :  { %v530_v20 = vadd.f32 %v529_v18, %v486_v17  ;;  %v488_v21 = vpop.f32.mrf.mxu0  ;;  %565 = vst [vmem:[%s826_s3] sm:$0xff] %v561_v19  ;;  %v562_v23 = vadd.f32 %v558_v16, %v528_v15 }
 0x115   :  { %v531_v22 = vpop.f32.mrf.mxu1 }
 0x116   :  { %v532_v24 = vadd.f32 %v531_v22, %v488_v21  ;;  %566 = vst [vmem:[%s826_s3 + $0x8] sm:$0xff] %v562_v23  ;;  %v563_v25 = vadd.f32 %v554_v12, %v530_v20 }
 0x118   :  { %567 = vst [vmem:[%s826_s3 + $0x10] sm:$0xff] %v563_v25  ;;  %v564_v26 = vadd.f32 %v558_v16, %v532_v24 }
 0x11a   :  { %568 = vst [vmem:[%s826_s3 + $0x18] sm:$0xff] %v564_v26 }
 0x11b   :  { %573 = vsyncpa [#allocation3], 1 }

</bundles_post_ra>
